<compile_context>
chip_gen: v5e
topology: v5e:2x2
jax: 0.10.0
libtpu: 0.0.40
codegen_flags: <defaults>
</compile_context>

<pallas_src>
import functools

import jax
import jax.numpy as jnp
from jax.experimental import pallas as pl
from jax.experimental.pallas import tpu as pltpu


def _get_user_kernel(tau_inv, n_topic,
                     x_ref, w1_ref, b1_ref, w2_ref, b2_ref, emb_ref, g_ref,
                     h_ref, sel_ref, p_ref):
    """One batch tile: (TB, n_z) -> h_user, selected_user, p_user (direct outputs)."""
    x = x_ref[...]

    # linear1 + tanh, linear2 -> logits.  K/N are tiny vs the MXU systolic dim;
    # the real cost of this kernel is HBM traffic (and EUP tanh/exp).
    h = jnp.tanh(
        jnp.dot(x, w1_ref[...], preferred_element_type=jnp.float32) + b1_ref[...]
    )
    logits = jnp.dot(h, w2_ref[...], preferred_element_type=jnp.float32) + b2_ref[...]

    # softmax over topics.  Exact divide: p_user is a user-visible probability
    # and h_user descends from the same kind of normalization (approx vrcp was
    # the source of the previous h_user mismatch).
    m = jnp.max(logits, axis=-1, keepdims=True)
    e = jnp.exp(logits - m)
    p_user = e / jnp.sum(e, axis=-1, keepdims=True)
    p_ref[...] = p_user.astype(p_ref.dtype)

    # gumbel_softmax(log(p_user + 1e-10), tau), soft (hard=False).
    # softmax is per-row shift invariant and log(softmax(logits)) = logits - c_row,
    # so softmax((log p + g)/tau) == softmax((logits + g)/tau); the +1e-10 is
    # negligible at softmax-probability scales.  No log needed, and this exp is
    # independent of the softmax above.
    y = (logits + g_ref[...]) * tau_inv
    m2 = jnp.max(y, axis=-1, keepdims=True)
    e2 = jnp.exp(y - m2)
    g_p_user = e2 / jnp.sum(e2, axis=-1, keepdims=True)
    # TODO(synk): on v7x the two (TB, n_topic) exps could be lane-packed into one
    # (TB, 2*n_topic) exp to halve EUP vreg pushes once HBM traffic is the floor.

    # h_user = g_p_user @ use_emb, written directly (no padded slab).
    h_ref[...] = jnp.dot(
        g_p_user, emb_ref[...], preferred_element_type=jnp.float32
    ).astype(h_ref.dtype)

    # selected_user = argmax(p_user) == argmax(logits): reuse m, first-index ties.
    idx = jax.lax.broadcasted_iota(jnp.int32, logits.shape, 1)
    sel_ref[...] = jnp.min(jnp.where(logits == m, idx, n_topic),
                           axis=-1, keepdims=True)


def _pick_batch_tile(B, block_b):
    """Pick the batch tile TB and the (possibly padded) batch extent.

    Prefers (a) no jnp.pad (TB divides B — padding is an extra HBM pass),
    (b) TB a multiple of 8 (sublane alignment; a full-array block is always
    legal), (c) >=2 grid steps so the "parallel" batch axis can spread across
    v7x's two TensorCores.  Returns (TB, B_padded).
    """
    block_b = max(8, (block_b // 8) * 8)
    if B <= block_b:
        for parts in (4, 2):                  # a few tiles for megacore, if clean
            t = B // parts
            if t >= 8 and t % 8 == 0 and t * parts == B:
                return t, B
        return B, B                           # single full-array tile, no pad
    t = block_b
    while t >= 8:                             # largest multiple-of-8 divisor <= block_b
        if B % t == 0:
            return t, B
        t -= 8
    return block_b, pl.cdiv(B, block_b) * block_b   # last resort: pad


def get_user_forward(x, w1, b1, w2, b2, emb, gumbel_noise, *, tau, block_b=2048):
    B, n_z = x.shape
    n_topic = emb.shape[0]

    TB, B_pad = _pick_batch_tile(B, block_b)
    if B_pad != B:
        x = jnp.pad(x, ((0, B_pad - B), (0, 0)))
        gumbel_noise = jnp.pad(gumbel_noise, ((0, B_pad - B), (0, 0)))
    grid = (B_pad // TB,)

    def batch_spec(cols):
        return pl.BlockSpec((TB, cols), lambda i: (i, 0))

    def full_spec(shape):
        return pl.BlockSpec(shape, lambda i: (0,) * len(shape))

    kernel = functools.partial(_get_user_kernel, float(1.0 / tau), n_topic)

    h_user, sel, p_user = pl.pallas_call(
        kernel,
        out_shape=(
            jax.ShapeDtypeStruct((B_pad, n_z), jnp.float32),
            jax.ShapeDtypeStruct((B_pad, 1), jnp.int32),
            jax.ShapeDtypeStruct((B_pad, n_topic), jnp.float32),
        ),
        grid=grid,
        in_specs=[
            batch_spec(n_z),        # x              (tiled over batch)
            full_spec(w1.shape),    # linear1 W      (resident in VMEM)
            full_spec(b1.shape),    # linear1 b
            full_spec(w2.shape),    # linear2 W
            full_spec(b2.shape),    # linear2 b
            full_spec(emb.shape),   # use_emb        (unpadded, resident)
            batch_spec(n_topic),    # gumbel noise   (tiled over batch)
        ],
        out_specs=(
            batch_spec(n_z),        # h_user   (direct output, no slab)
            batch_spec(1),          # selected_user
            batch_spec(n_topic),    # p_user
        ),
        compiler_params=pltpu.CompilerParams(
            dimension_semantics=("parallel",),   # batch tiles across v7x's 2 TCs
        ),
    )(x, w1, b1, w2, b2, emb, gumbel_noise)

    if B_pad != B:
        h_user, sel, p_user = h_user[:B], sel[:B], p_user[:B]
    return h_user, sel[:, 0], p_user


def sample_gumbel(key, shape, eps=1e-20):
    # Kept outside the kernel so the pure-JAX reference sees identical noise.
    # TODO(synk): could be generated in-kernel (pltpu.prng_seed + prng_random_bits)
    # to drop the (B, n_topic) HBM input stream at large batch.
    u = jax.random.uniform(key, shape, dtype=jnp.float32)
    return -jnp.log(-jnp.log(u + eps) + eps)


if __name__ == "__main__":
    # Pin f32 matmuls to full precision for both the kernel trace and the
    # reference (TPU DEFAULT truncates f32 matmul inputs to bf16, which would
    # make the two paths diverge at the ~1e-3 level).
    jax.config.update("jax_default_matmul_precision", "highest")

    # config: n_z=32, n_topic_num=16, tau=0.67, one_user=True, batch=8
    B, n_z, n_topic = 8, 32, 16
    tau = 0.67

    key = jax.random.PRNGKey(0)
    kx, k1, k2, k3, k4, k5, kg = jax.random.split(key, 7)

    x = jax.random.normal(kx, (B, n_z), dtype=jnp.float32)

    # Deterministic synthetic parameters (shapes from GetUser.__init__).
    w1 = jax.random.normal(k1, (n_z, n_z // 2), dtype=jnp.float32) * 0.1       # linear1
    b1 = jax.random.normal(k2, (1, n_z // 2), dtype=jnp.float32) * 0.1
    w2 = jax.random.normal(k3, (n_z // 2, n_topic), dtype=jnp.float32) * 0.1   # linear2
    b2 = jax.random.normal(k4, (1, n_topic), dtype=jnp.float32) * 0.1
    emb = jax.random.normal(k5, (n_topic, n_z), dtype=jnp.float32)             # use_emb

    g = sample_gumbel(kg, (B, n_topic))

    h_user, selected_user, p_user = get_user_forward(
        x, w1, b1, w2, b2, emb, g, tau=tau
    )
    jax.block_until_ready((h_user, selected_user, p_user))

    # Pure-JAX reference (mirrors the PyTorch forward, training / one_user=True).
    h_mid = jnp.tanh(x @ w1 + b1)
    logits_ref = h_mid @ w2 + b2
    p_ref = jax.nn.softmax(logits_ref, axis=-1)
    gp_ref = jax.nn.softmax((jnp.log(p_ref + 1e-10) + g) / tau, axis=-1)
    hu_ref = gp_ref @ emb
    sel_ref = jnp.argmax(p_ref, axis=-1).astype(jnp.int32)

    assert p_user.shape == (B, n_topic) and h_user.shape == (B, n_z)
    assert jnp.allclose(p_user, p_ref, atol=1e-3), "p_user mismatch"
    assert jnp.allclose(h_user, hu_ref, atol=2e-3), "h_user mismatch"
    assert jnp.array_equal(selected_user, sel_ref), "selected_user mismatch"

    # TODO(synk): is_test=True branch (random / fixed topic-id embedding lookup)
    # is host-side control flow + gather; not part of the hot-path kernel.
    print("KERNEL_OK")
</pallas_src>

<mosaic_0001>
module attributes {stable_mosaic.version = 11 : i64} {
  func.func @_get_user_kernel(%arg0: i32, %arg1: memref<8x32xf32, #tpu.memory_space<vmem>>, %arg2: memref<32x16xf32, #tpu.memory_space<vmem>>, %arg3: memref<1x16xf32, #tpu.memory_space<vmem>>, %arg4: memref<16x16xf32, #tpu.memory_space<vmem>>, %arg5: memref<1x16xf32, #tpu.memory_space<vmem>>, %arg6: memref<16x32xf32, #tpu.memory_space<vmem>>, %arg7: memref<8x16xf32, #tpu.memory_space<vmem>>, %arg8: memref<8x32xf32, #tpu.memory_space<vmem>>, %arg9: memref<8x1xi32, #tpu.memory_space<vmem>>, %arg10: memref<8x16xf32, #tpu.memory_space<vmem>>) attributes {dimension_semantics = [#tpu.dimension_semantics<parallel>], iteration_bounds = array<i64: 1>, scalar_prefetch = 0 : i64, scratch_operands = 0 : i64, tpu.core_type = #tpu.core_type<tc>, window_params = [{transform_indices = @transform_0, window_bounds = array<i64: 8, 32>}, {pipeline_mode = #tpu.pipeline_mode<synchronous>, transform_indices = @transform_1, window_bounds = array<i64: 32, 16>}, {pipeline_mode = #tpu.pipeline_mode<synchronous>, transform_indices = @transform_2, window_bounds = array<i64: 1, 16>}, {pipeline_mode = #tpu.pipeline_mode<synchronous>, transform_indices = @transform_3, window_bounds = array<i64: 16, 16>}, {pipeline_mode = #tpu.pipeline_mode<synchronous>, transform_indices = @transform_4, window_bounds = array<i64: 1, 16>}, {pipeline_mode = #tpu.pipeline_mode<synchronous>, transform_indices = @transform_5, window_bounds = array<i64: 16, 32>}, {transform_indices = @transform_6, window_bounds = array<i64: 8, 16>}, {transform_indices = @transform_7, window_bounds = array<i64: 8, 32>}, {transform_indices = @transform_8, window_bounds = array<i64: 8, 1>}, {transform_indices = @transform_9, window_bounds = array<i64: 8, 16>}]} {
    %c0 = arith.constant 0 : index
    %c0_0 = arith.constant 0 : index
    %0 = vector.load %arg1[%c0, %c0_0] : memref<8x32xf32, #tpu.memory_space<vmem>>, vector<8x32xf32>
    %c0_1 = arith.constant 0 : index
    %c0_2 = arith.constant 0 : index
    %1 = vector.load %arg2[%c0_1, %c0_2] : memref<32x16xf32, #tpu.memory_space<vmem>>, vector<32x16xf32>
    %cst = arith.constant dense<0.000000e+00> : vector<8x16xf32>
    %2 = tpu.matmul %0, %1, %cst {dimension_numbers = #tpu.dot_dimension_numbers<[1], [0], [0], [1], [0, 0, 1, 1], [], []>, precision = #tpu.contract_precision<fp32>} : vector<8x32xf32>, vector<32x16xf32>, vector<8x16xf32> -> vector<8x16xf32>
    %c0_3 = arith.constant 0 : index
    %c0_4 = arith.constant 0 : index
    %3 = vector.load %arg3[%c0_3, %c0_4] : memref<1x16xf32, #tpu.memory_space<vmem>>, vector<1x16xf32>
    %4 = vector.broadcast %3 : vector<1x16xf32> to vector<8x16xf32>
    %5 = arith.addf %2, %4 : vector<8x16xf32>
    %6 = math.tanh %5 : vector<8x16xf32>
    %c0_5 = arith.constant 0 : index
    %c0_6 = arith.constant 0 : index
    %7 = vector.load %arg4[%c0_5, %c0_6] : memref<16x16xf32, #tpu.memory_space<vmem>>, vector<16x16xf32>
    %cst_7 = arith.constant dense<0.000000e+00> : vector<8x16xf32>
    %8 = tpu.matmul %6, %7, %cst_7 {dimension_numbers = #tpu.dot_dimension_numbers<[1], [0], [0], [1], [0, 0, 1, 1], [], []>, precision = #tpu.contract_precision<fp32>} : vector<8x16xf32>, vector<16x16xf32>, vector<8x16xf32> -> vector<8x16xf32>
    %c0_8 = arith.constant 0 : index
    %c0_9 = arith.constant 0 : index
    %9 = vector.load %arg5[%c0_8, %c0_9] : memref<1x16xf32, #tpu.memory_space<vmem>>, vector<1x16xf32>
    %10 = vector.broadcast %9 : vector<1x16xf32> to vector<8x16xf32>
    %11 = arith.addf %8, %10 : vector<8x16xf32>
    %cst_10 = arith.constant dense<0xFF800000> : vector<8xf32>
    %12 = vector.multi_reduction <maximumf>, %11, %cst_10 [1] : vector<8x16xf32> to vector<8xf32>
    %13 = vector.shape_cast %12 : vector<8xf32> to vector<8x1xf32>
    %14 = vector.broadcast %13 : vector<8x1xf32> to vector<8x16xf32>
    %15 = arith.subf %11, %14 : vector<8x16xf32>
    %16 = math.exp %15 : vector<8x16xf32>
    %cst_11 = arith.constant dense<0.000000e+00> : vector<8xf32>
    %17 = vector.multi_reduction <add>, %16, %cst_11 [1] : vector<8x16xf32> to vector<8xf32>
    %18 = vector.shape_cast %17 : vector<8xf32> to vector<8x1xf32>
    %19 = vector.broadcast %18 : vector<8x1xf32> to vector<8x16xf32>
    %20 = arith.divf %16, %19 : vector<8x16xf32>
    %c0_12 = arith.constant 0 : index
    %c0_13 = arith.constant 0 : index
    %21 = vector.load %arg10[%c0_12, %c0_13] : memref<8x16xf32, #tpu.memory_space<vmem>>, vector<8x16xf32>
    tpu.vector_store %arg10[%c0_12, %c0_13], %20 {strides = array<i32>} : memref<8x16xf32, #tpu.memory_space<vmem>>, vector<8x16xf32>,
    %c0_14 = arith.constant 0 : index
    %c0_15 = arith.constant 0 : index
    %22 = vector.load %arg7[%c0_14, %c0_15] : memref<8x16xf32, #tpu.memory_space<vmem>>, vector<8x16xf32>
    %23 = arith.addf %11, %22 : vector<8x16xf32>
    %cst_16 = arith.constant 1.49253726 : f32
    %24 = vector.broadcast %cst_16 : f32 to vector<8x16xf32>
    %25 = arith.mulf %23, %24 : vector<8x16xf32>
    %cst_17 = arith.constant dense<0xFF800000> : vector<8xf32>
    %26 = vector.multi_reduction <maximumf>, %25, %cst_17 [1] : vector<8x16xf32> to vector<8xf32>
    %27 = vector.shape_cast %26 : vector<8xf32> to vector<8x1xf32>
    %28 = vector.broadcast %27 : vector<8x1xf32> to vector<8x16xf32>
    %29 = arith.subf %25, %28 : vector<8x16xf32>
    %30 = math.exp %29 : vector<8x16xf32>
    %cst_18 = arith.constant dense<0.000000e+00> : vector<8xf32>
    %31 = vector.multi_reduction <add>, %30, %cst_18 [1] : vector<8x16xf32> to vector<8xf32>
    %32 = vector.shape_cast %31 : vector<8xf32> to vector<8x1xf32>
    %33 = vector.broadcast %32 : vector<8x1xf32> to vector<8x16xf32>
    %34 = arith.divf %30, %33 : vector<8x16xf32>
    %c0_19 = arith.constant 0 : index
    %c0_20 = arith.constant 0 : index
    %35 = vector.load %arg6[%c0_19, %c0_20] : memref<16x32xf32, #tpu.memory_space<vmem>>, vector<16x32xf32>
    %cst_21 = arith.constant dense<0.000000e+00> : vector<8x32xf32>
    %36 = tpu.matmul %34, %35, %cst_21 {dimension_numbers = #tpu.dot_dimension_numbers<[1], [0], [0], [1], [0, 0, 1, 1], [], []>, precision = #tpu.contract_precision<fp32>} : vector<8x16xf32>, vector<16x32xf32>, vector<8x32xf32> -> vector<8x32xf32>
    %c0_22 = arith.constant 0 : index
    %c0_23 = arith.constant 0 : index
    %37 = vector.load %arg8[%c0_22, %c0_23] : memref<8x32xf32, #tpu.memory_space<vmem>>, vector<8x32xf32>
    tpu.vector_store %arg8[%c0_22, %c0_23], %36 {strides = array<i32>} : memref<8x32xf32, #tpu.memory_space<vmem>>, vector<8x32xf32>,
    %38 = tpu.iota {dimensions = array<i32: 1>} : vector<8x16xi32>
    %39 = vector.broadcast %13 : vector<8x1xf32> to vector<8x16xf32>
    %40 = arith.cmpf oeq, %11, %39 : vector<8x16xf32>
    %c16_i32 = arith.constant 16 : i32
    %41 = vector.broadcast %c16_i32 : i32 to vector<8x16xi32>
    %42 = arith.select %40, %38, %41 : vector<8x16xi1>, vector<8x16xi32>
    %cst_24 = arith.constant dense<2147483647> : vector<8xi32>
    %43 = vector.multi_reduction <minsi>, %42, %cst_24 [1] : vector<8x16xi32> to vector<8xi32>
    %44 = vector.shape_cast %43 : vector<8xi32> to vector<8x1xi32>
    %c0_25 = arith.constant 0 : index
    %c0_26 = arith.constant 0 : index
    %45 = vector.load %arg9[%c0_25, %c0_26] : memref<8x1xi32, #tpu.memory_space<vmem>>, vector<8x1xi32>
    tpu.vector_store %arg9[%c0_25, %c0_26], %44 {strides = array<i32>} : memref<8x1xi32, #tpu.memory_space<vmem>>, vector<8x1xi32>,
    return
  }
  func.func @transform_0(%arg0: i32) -> (i32, i32) {
    %c0_i32 = arith.constant 0 : i32
    %c0_i32_0 = arith.constant 0 : i32
    return %arg0, %c0_i32 : i32, i32
  }
  func.func @transform_1(%arg0: i32) -> (i32, i32) {
    %c0_i32 = arith.constant 0 : i32
    %c0_i32_0 = arith.constant 0 : i32
    %c0_i32_1 = arith.constant 0 : i32
    return %c0_i32, %c0_i32_0 : i32, i32
  }
  func.func @transform_2(%arg0: i32) -> (i32, i32) {
    %c0_i32 = arith.constant 0 : i32
    %c0_i32_0 = arith.constant 0 : i32
    %c0_i32_1 = arith.constant 0 : i32
    return %c0_i32, %c0_i32_0 : i32, i32
  }
  func.func @transform_3(%arg0: i32) -> (i32, i32) {
    %c0_i32 = arith.constant 0 : i32
    %c0_i32_0 = arith.constant 0 : i32
    %c0_i32_1 = arith.constant 0 : i32
    return %c0_i32, %c0_i32_0 : i32, i32
  }
  func.func @transform_4(%arg0: i32) -> (i32, i32) {
    %c0_i32 = arith.constant 0 : i32
    %c0_i32_0 = arith.constant 0 : i32
    %c0_i32_1 = arith.constant 0 : i32
    return %c0_i32, %c0_i32_0 : i32, i32
  }
  func.func @transform_5(%arg0: i32) -> (i32, i32) {
    %c0_i32 = arith.constant 0 : i32
    %c0_i32_0 = arith.constant 0 : i32
    %c0_i32_1 = arith.constant 0 : i32
    return %c0_i32, %c0_i32_0 : i32, i32
  }
  func.func @transform_6(%arg0: i32) -> (i32, i32) {
    %c0_i32 = arith.constant 0 : i32
    %c0_i32_0 = arith.constant 0 : i32
    return %arg0, %c0_i32 : i32, i32
  }
  func.func @transform_7(%arg0: i32) -> (i32, i32) {
    %c0_i32 = arith.constant 0 : i32
    %c0_i32_0 = arith.constant 0 : i32
    return %arg0, %c0_i32 : i32, i32
  }
  func.func @transform_8(%arg0: i32) -> (i32, i32) {
    %c0_i32 = arith.constant 0 : i32
    %c0_i32_0 = arith.constant 0 : i32
    return %arg0, %c0_i32 : i32, i32
  }
  func.func @transform_9(%arg0: i32) -> (i32, i32) {
    %c0_i32 = arith.constant 0 : i32
    %c0_i32_0 = arith.constant 0 : i32
    return %arg0, %c0_i32 : i32, i32
  }
}

</mosaic_0001>

<bundles_post_ra>
// kernel: tpu_custom_call.1
= control target key start
LH: loop header
LB: loop body
LE: loop exit
PB: predicated region body
PF: predicated region fallthrough
CT: control target
= control target key end

     0   :  { %15 = vsyncpa [#allocation3], 0  ;;  %vm40_vm0 = vcmask 261120   ;;  %s854_s0 = inlined_call_operand.vmem [shape: f32[8,32], index: 0, kind: input, shape index: {}]   ;;  %s855_s1 = inlined_call_operand.vmem [shape: f32[32,16], index: 1, kind: input, shape index: {}]   ;;  %s856_s2 = inlined_call_operand.vmem [shape: f32[1,16], index: 2, kind: input, shape index: {}]   ;;  %s857_s3 = inlined_call_operand.vmem [shape: f32[16,16], index: 3, kind: input, shape index: {}]   ;;  %s858_s4 = inlined_call_operand.vmem [shape: f32[1,16], index: 4, kind: input, shape index: {}]   ;;  %s859_s5 = inlined_call_operand.vmem [shape: f32[16,32], index: 5, kind: input, shape index: {}]   ;;  %s860_s6 = inlined_call_operand.vmem [shape: f32[8,16], index: 6, kind: input, shape index: {}]   ;;  %s861_s7 = inlined_call_operand.hbm [shape: f32[8,32], index: 7, kind: output, shape index: {0}]   ;;  %s862_s8 = inlined_call_operand.vmem [shape: s32[8,1], index: 8, kind: output, shape index: {1}]   ;;  %s863_s9 = inlined_call_operand.hbm [shape: f32[8,16], index: 9, kind: output, shape index: {2}]  }
   0x1   :  { %v35_v0 = vld [vmem:[%s855_s1 + $0x18] sm:$0xff]  ;;  %v34_v1 = vld [vmem:[%s855_s1 + $0x10] sm:$0xff]  ;;  %v33_v2 = vld [vmem:[%s855_s1 + $0x8] sm:$0xff] }
   0x2   :  { %v56_v3 = vand.u32 4294901760, %v35_v0  ;;  %v58_v4 = vand.u32 4294901760, %v34_v1  ;;  %v60_v5 = vand.u32 4294901760, %v33_v2  ;;  %v32_v6 = vld [vmem:[%s855_s1] sm:$0xff] }
   0x3   :  { %v31_v7 = vld [vmem:[%s854_s0] sm:$0xff]  ;;  %v62_v8 = vand.u32 4294901760, %v32_v6 }
   0x4   :  { %v42_v9 = vsel %vm40_vm0, %v31_v7, 0  ;;  %v86_v10 = vsub.f32 %v35_v0, %v56_v3  ;;  %57 = vmatpush.msra.mxu0 %v56_v3  ;;  %v92_v11 = vsub.f32 %v34_v1, %v58_v4  ;;  %157 = vmatpush.msra.mxu3 %v56_v3  ;;  %v98_v12 = vsub.f32 %v33_v2, %v60_v5 }
   0x5   :  { %v64_v13 = vand.u32 4294901760, %v42_v9 }
   0x6   :  { %16 = vsyncpa [#allocation5], 0  ;;  %v104_v14 = vsub.f32 %v32_v6, %v62_v8  ;;  %128 = vmatpush.msra.mxu2 %v86_v10  ;;  %59 = vmatpush.msra.mxu0 %v58_v4  ;;  %v87_v15 = vand.u32 4294901760, %v86_v10  ;;  %v93_v16 = vand.u32 4294901760, %v92_v11  ;;  %v99_v18 = vand.u32 4294901760, %v98_v12  ;;  %v231_v31 = vld [vmem:[%s857_s3 + $0x8] sm:$0xff] }
   0x7   :  { %v65_v17 = vsub.f32 %v42_v9, %v64_v13  ;;  %159 = vmatpush.msra.mxu3 %v58_v4  ;;  %v254_v32 = vand.u32 4294901760, %v231_v31  ;;  %v230_v33 = vld [vmem:[%s857_s3] sm:$0xff]  ;;  %vm236_vm1 = vcmask 130048   ;;  %s657_s30 = sshll.u32 %s863_s9, 4  ;;  %vm635_vm12 = vcmask 7168   ;;  %s740_s9 = smov [#allocation2]   ;;  %s658_s30 = int_to_ptr.hbm [resolvable:$true] %s657_s30 }
   0x8   :  { %v105_v19 = vand.u32 4294901760, %v104_v14  ;;  %131 = vmatpush.msra.mxu2 %v92_v11  ;;  %v88_v20 = vsub.f32 %v86_v10, %v87_v15  ;;  %61 = vmatpush.msra.mxu0 %v60_v5  ;;  %v94_v21 = vsub.f32 %v92_v11, %v93_v16  ;;  %v100_v22 = vsub.f32 %v98_v12, %v99_v18  ;;  %v675_v43 = vld [vmem:[%s856_s2] ss:$0 sm:$0xff]  ;;  %s642_s12 = sshll.u32 %s740_s9, 4  ;;  %s644_s15 = sshll.u32 %s861_s7, 4  ;;  %s643_s12 = int_to_ptr.vmem [resolvable:$true] %s642_s12  ;;  %s645_s15 = int_to_ptr.hbm [resolvable:$true] %s644_s15 }
   0x9   :  { %v66_v23 = vand.u32 4294901760, %v65_v17  ;;  %161 = vmatpush.msra.mxu3 %v60_v5  ;;  %v282_v34 = vsub.f32 %v231_v31, %v254_v32  ;;  %v256_v35 = vand.u32 4294901760, %v230_v33  ;;  %v676_v63 = vld [vmem:[%s858_s4] ss:$0 sm:$0xff] }
   0xa   :  { %v89_v24 = vand.u32 4294901760, %v88_v20  ;;  %134 = vmatpush.msra.mxu2 %v98_v12  ;;  %v95_v25 = vand.u32 4294901760, %v94_v21  ;;  %63 = vmatpush.msra.mxu0 %v62_v8  ;;  %v106_v27 = vsub.f32 %v104_v14, %v105_v19  ;;  %v101_v28 = vand.u32 4294901760, %v100_v22  ;;  %v424_v11 = vld [vmem:[%s860_s6] sm:$0xff] }
   0xb   :  { %v67_v26 = vsub.f32 %v65_v17, %v66_v23  ;;  %163 = vmatpush.msra.mxu3 %v62_v8  ;;  %v283_v36 = vand.u32 4294901760, %v282_v34  ;;  %v288_v37 = vsub.f32 %v230_v33, %v256_v35  ;;  %v452_v33 = vld [vmem:[%s859_s5 + $0x8] sm:$0xff] }
   0xc   :  { %186 = vmatpush.msrb.mxu0 %v87_v15  ;;  %90 = vmatpush.msra.mxu1 %v89_v24  ;;  %v107_v30 = vand.u32 4294901760, %v106_v27 }
   0xd   :  { %137 = vmatpush.msra.mxu2 %v104_v14  ;;  %v68_v29 = vand.u32 4294901760, %v67_v26  ;;  %167 = vmatmul.f32.vlgmr.msra.gmra.mxu3 %v66_v23  ;;  %v284_v38 = vsub.f32 %v282_v34, %v283_v36  ;;  %v289_v39 = vand.u32 4294901760, %v288_v37 }
   0xe   :  { %140 = vmatmul.f32.vlgmr.msra.gmra.mxu2 %v65_v17  ;;  %96 = vmatpush.msra.mxu1 %v95_v25  ;;  %v616_v17 = vlaneseq }
   0xf   :  { %69 = vmatmul.f32.vlgmr.msra.gmra.mxu0 %v68_v29  ;;  %255 = vmatpush.msrb.mxu2 %v254_v32  ;;  %v285_v40 = vand.u32 4294901760, %v284_v38  ;;  %v290_v41 = vsub.f32 %v288_v37, %v289_v39 }
  0x10   :  { %190 = vmatpush.msrb.mxu0 %v93_v16  ;;  %102 = vmatpush.msra.mxu1 %v101_v28 }
  0x11   :  { %257 = vmatpush.msrb.mxu2 %v256_v35  ;;  %286 = vmatpush.msrb.mxu3 %v285_v40  ;;  %v291_v42 = vand.u32 4294901760, %v290_v41 }
  0x12   :  { %194 = vmatpush.msrb.mxu0 %v99_v18  ;;  %108 = vmatpush.msra.mxu1 %v107_v30  ;;  %v617_v18 = vand.u32 127, %v616_v17 }
  0x13   :  { %110 = vmatmul.f32.vlgmr.msra.gmra.mxu1 %v64_v13  ;;  %366 = vmatpush.msra.mxu2 %v283_v36 }
  0x14   :  { %198 = vmatpush.msrb.mxu0 %v105_v19  ;;  %217 = vmatpush.msrb.mxu1 %v56_v3 }
  0x15   :  { %370 = vmatpush.msra.mxu2 %v289_v39  ;;  %292 = vmatpush.msrb.mxu3 %v291_v42 }
  0x16   :  { %219 = vmatpush.msrb.mxu1 %v58_v4  ;;  %314 = vmatpush.msra.mxu0 %v282_v34  ;;  %v470_v34 = vand.u32 4294901760, %v452_v33 }
  0x17   :  { %200 = vmatmul.f32.vlgmr.msrb.gmra.mxu0 %v64_v13  ;;  %391 = vmatpush.msra.mxu3 %v254_v32 }
  0x18   :  { %221 = vmatpush.msrb.mxu1 %v60_v5  ;;  %317 = vmatpush.msra.mxu0 %v288_v37  ;;  %v498_v36 = vsub.f32 %v452_v33, %v470_v34 }
  0x19   :  { %393 = vmatpush.msra.mxu3 %v256_v35 }
  0x1a   :  { %223 = vmatpush.msrb.mxu1 %v62_v8  ;;  %471 = vmatpush.msrb.mxu0 %v470_v34  ;;  %v499_v38 = vand.u32 4294901760, %v498_v36 }
  0x1b   :  { %225 = vmatmul.f32.vlgmr.msrb.gmra.mxu1 %v64_v13 }
  0x1c   :  { %339 = vmatpush.msra.mxu1 %v254_v32  ;;  %v500_v40 = vsub.f32 %v498_v36, %v499_v38 }
  0x1e   :  { %341 = vmatpush.msra.mxu1 %v256_v35  ;;  %v451_v35 = vld [vmem:[%s859_s5] sm:$0xff]  ;;  %v501_v42 = vand.u32 4294901760, %v500_v40  ;;  %s739_s5 = smov [#allocation4]  }
  0x1f   :  { %v472_v37 = vand.u32 4294901760, %v451_v35  ;;  %s655_s27 = sshll.u32 %s739_s5, 4  ;;  %s656_s27 = int_to_ptr.vmem [resolvable:$true] %s655_s27 }
  0x20   :  { %502 = vmatpush.msrb.mxu1 %v501_v42 }
  0x21   :  { %v504_v39 = vsub.f32 %v451_v35, %v472_v37  ;;  %473 = vmatpush.msrb.mxu0 %v472_v37 }
  0x23   :  { %v505_v41 = vand.u32 4294901760, %v504_v39 }
  0x8c   :  { %v70_v44 = vpop.f32.mrf.mxu0 }
  0x8d   :  { %v71_v45 = vadd.f32 %v675_v43, %v70_v44  ;;  %v506_v43 = vsub.f32 %v504_v39, %v505_v41 }
  0x90   :  { %v111_v46 = vpop.f32.mrf.mxu1  ;;  %v168_v49 = vpop.f32.mrf.mxu3 }
  0x91   :  { %v141_v47 = vpop.f32.mrf.mxu2  ;;  %v112_v48 = vadd.f32 %v111_v46, %v71_v45  ;;  %v507_v45 = vand.u32 4294901760, %v506_v43 }
  0x93   :  { %v142_v50 = vadd.f32 %v141_v47, %v112_v48  ;;  %508 = vmatpush.msrb.mxu1 %v507_v45 }
  0x94   :  { %v201_v51 = vpop.f32.mrf.mxu0 }
  0x95   :  { %v169_v52 = vadd.f32 %v168_v49, %v142_v50 }
  0x97   :  { %v202_v53 = vadd.f32 %v201_v51, %v169_v52 }
  0x98   :  { %v226_v54 = vpop.f32.mrf.mxu1 }
  0x99   :  { %v227_v55 = vadd.f32 %v226_v54, %v202_v53 }
  0x9b   :  { %677 = vtanh.f32 %v227_v55 }
  0xa1   :  { %v678_v56 = vpop.eup %677 }
  0xa2   :  { %v238_v57 = vsel %vm236_vm1, %v678_v56, 0 }
  0xa3   :  { %v258_v58 = vand.u32 4294901760, %v238_v57 }
  0xa5   :  { %294 = vmatmul.f32.vlgmr.msrb.gmra.mxu3 %v258_v58  ;;  %v259_v59 = vsub.f32 %v238_v57, %v258_v58 }
  0xa6   :  { %555 = vmatpush.msrb.mxu3 %v470_v34 }
  0xa7   :  { %320 = vmatmul.f32.vlgmr.msra.gmra.mxu0 %v259_v59  ;;  %v260_v60 = vand.u32 4294901760, %v259_v59 }
  0xa8   :  { %557 = vmatpush.msrb.mxu3 %v472_v37  ;;  %582 = vmatpush.msra.mxu0 %v499_v38 }
  0xa9   :  { %345 = vmatmul.f32.vlgmr.msra.gmra.mxu1 %v260_v60  ;;  %v261_v61 = vsub.f32 %v259_v59, %v260_v60 }
  0xaa   :  { %586 = vmatpush.msra.mxu0 %v505_v41  ;;  %607 = vmatpush.msra.mxu1 %v470_v34 }
  0xab   :  { %v262_v62 = vand.u32 4294901760, %v261_v61 }
  0xac   :  { %609 = vmatpush.msra.mxu1 %v472_v37 }
  0xad   :  { %263 = vmatmul.f32.vlgmr.msrb.gmra.mxu2 %v262_v62  ;;  %395 = vmatmul.f32.vlgmr.msra.gmra.mxu3 %v258_v58 }
  0xae   :  { %530 = vmatpush.msrb.mxu2 %v498_v36 }
  0xb0   :  { %533 = vmatpush.msrb.mxu2 %v504_v39 }
  0xb5   :  { %372 = vmatmul.f32.vlgmr.msra.gmra.mxu2 %v258_v58 }
 0x124   :  { %v321_v4 = vpop.f32.mrf.mxu0 }
 0x126   :  { %v346_v6 = vpop.f32.mrf.mxu1 }
 0x128   :  { %v295_v0 = vpop.f32.mrf.mxu3 }
 0x130   :  { %v264_v1 = vpop.f32.mrf.mxu2  ;;  %v396_v10 = vpop.f32.mrf.mxu3 }
 0x131   :  { %v265_v2 = vadd.f32 %v676_v63, %v264_v1 }
 0x133   :  { %v296_v3 = vadd.f32 %v295_v0, %v265_v2 }
 0x135   :  { %v322_v5 = vadd.f32 %v321_v4, %v296_v3 }
 0x137   :  { %v347_v7 = vadd.f32 %v346_v6, %v322_v5 }
 0x138   :  { %v373_v8 = vpop.f32.mrf.mxu2 }
 0x139   :  { %v374_v9 = vadd.f32 %v373_v8, %v347_v7 }
 0x13b   :  { %v397_v12 = vadd.f32 %v396_v10, %v374_v9 }
 0x13d   :  { %v399_v13 = vsel %vm236_vm1, %v397_v12, -inf  ;;  %v425_v14 = vadd.f32 %v424_v11, %v397_v12 }
 0x13e   :  { %400 = vmax.xlane.f32.xlu1 %v399_v13 }
 0x13f   :  { %v426_v15 = vmul.f32 1.4925373, %v425_v14 }
 0x141   :  { %v427_v16 = vsel %vm236_vm1, %v426_v15, -inf }
 0x142   :  { %428 = vmax.xlane.f32.xlu0 %v427_v16 }
 0x1b1   :  { %v401_v19 = vpop.xlane.xlu1 %400 }
 0x1b2   :  { %v402_v20 = vsub.f32 %v397_v12, %v401_v19  ;;  %vm618_vm2 = vcmp.eq.f32.partialorder %v397_v12, %v401_v19 }
 0x1b3   :  { %v619_v21 = vsel %vm618_vm2, %v617_v18, 16 }
 0x1b4   :  { %v403_v22 = vmul.f32 1.442695, %v402_v20  ;;  %v620_v23 = vsel %vm236_vm1, %v619_v21, 2147483647 }
 0x1b5   :  { %v429_v24 = vpop.xlane.xlu0 %428  ;;  %v622_v25 = vshra.s32 %v620_v23, 16  ;;  %v621_v44 = vand.u32 65535, %v620_v23 }
 0x1b6   :  { %679 = vpow2.f32 %v403_v22  ;;  %v430_v26 = vsub.f32 %v426_v15, %v429_v24 }
 0x1b7   :  { %v624_v27 = vcvt.s32.f32 %v622_v25  ;;  %v623_v47 = vcvt.s32.f32 %v621_v44 }
 0x1b8   :  { %v431_v28 = vmul.f32 1.442695, %v430_v26 }
 0x1b9   :  { %625 = vmin.xlane.f32.xlu1 %v624_v27 }
 0x1ba   :  { %681 = vpow2.f32 %v431_v28 }
 0x1bc   :  { %v826_v29 = vpop.eup %679 }
 0x1bd   :  { %v405_v30 = vsel %vm236_vm1, %v826_v29, 0.0 }
 0x1be   :  { %406 = vadd.xlane.f32.xlu2 %v405_v30 }
 0x1c0   :  { %v830_v31 = vpop.eup %681 }
 0x1c1   :  { %v433_v32 = vsel %vm236_vm1, %v830_v31, 0.0 }
 0x1c2   :  { %434 = vadd.xlane.f32.xlu0 %v433_v32 }
 0x22c   :  { %v626_v46 = vpop.xlane.xlu1 %625 }
 0x22d   :  { %vm627_vm3 = vcmp.eq.f32.partialorder %v624_v27, %v626_v46  ;;  %v632_v15 = vcvt.f32.s32 %v626_v46 }
 0x22e   :  { %v628_v48 = vsel %vm627_vm3, %v623_v47, inf }
 0x22f   :  { %629 = vmin.xlane.f32.xlu2 %v628_v48  ;;  %v633_v17 = vshll.u32 %v632_v15, 16 }
 0x231   :  { %v407_v49 = vpop.xlane.xlu2 %406 }
 0x232   :  { %683 = vrcp.f32 %v407_v49  ;;  %v417_v55 = vand.u32 2147483647, %v407_v49  ;;  %v419_v56 = vand.u32 2147483648, %v407_v49  ;;  %vm413_vm5 = vweird.f32 %v407_v49 }
 0x234   :  { %v420_v61 = vor.u32 1.1754944e-38, %v419_v56  ;;  %vm418_vm7 = vcmp.eq.f32.partialorder %v417_v55, 8.507059e+37 }
 0x235   :  { %v435_v50 = vpop.xlane.xlu0 %434 }
 0x236   :  { %685 = vrcp.f32 %v435_v50  ;;  %v447_v62 = vand.u32 2147483648, %v435_v50  ;;  %v445_v0 = vand.u32 2147483647, %v435_v50  ;;  %vm441_vm9 = vweird.f32 %v435_v50 }
 0x238   :  { %v684_v51 = vpop.eup %683  ;;  %v448_v5 = vor.u32 1.1754944e-38, %v447_v62  ;;  %vm446_vm11 = vcmp.eq.f32.partialorder %v445_v0, 8.507059e+37 }
 0x239   :  { %v409_v52 = vmul.f32 %v684_v51, %v407_v49  ;;  %vm414_vm4 = vweird.f32 %v684_v51 }
 0x23a   :  { %vm415_vm6 = vmor %vm413_vm5, %vm414_vm4 }
 0x23b   :  { %v410_v53 = vsub.f32 1.0, %v409_v52 }
 0x23c   :  { %v686_v54 = vpop.eup %685 }
 0x23d   :  { %v411_v57 = vmul.f32 %v684_v51, %v410_v53  ;;  %v437_v58 = vmul.f32 %v686_v54, %v435_v50  ;;  %vm442_vm8 = vweird.f32 %v686_v54 }
 0x23e   :  { %vm443_vm10 = vmor %vm441_vm9, %vm442_vm8 }
 0x23f   :  { %v412_v59 = vadd.f32 %v684_v51, %v411_v57  ;;  %v438_v60 = vsub.f32 1.0, %v437_v58 }
 0x241   :  { %v439_v63 = vmul.f32 %v686_v54, %v438_v60  ;;  %v416_v1 = vsel %vm415_vm6, %v684_v51, %v412_v59 }
 0x242   :  { %v421_v2 = vsel %vm418_vm7, %v420_v61, %v416_v1 }
 0x243   :  { %v440_v3 = vadd.f32 %v686_v54, %v439_v63  ;;  %v422_v4 = vmul.f32 %v826_v29, %v421_v2 }
 0x245   :  { %v444_v6 = vsel %vm443_vm10, %v686_v54, %v440_v3  ;;  %423 = vst.msk [vmem:[#allocation4] sm:$0xff] %vm236_vm1, %v422_v4 }
 0x246   :  { %v449_v7 = vsel %vm446_vm11, %v448_v5, %v444_v6  ;;  %660 = dma.vmem_to_hbm [thread:$0]  %s656_s27, 128, %s658_s30, [#allocation5]  }
 0x247   :  { %v450_v8 = vmul.f32 %v830_v31, %v449_v7 }
 0x249   :  { %v454_v9 = vsel %vm236_vm1, %v450_v8, 0 }
 0x24a   :  { %v474_v10 = vand.u32 4294901760, %v454_v9 }
 0x24c   :  { %510 = vmatmul.f32.vlgmr.msrb.gmra.mxu1 %v474_v10  ;;  %v475_v11 = vsub.f32 %v454_v9, %v474_v10 }
 0x24e   :  { %536 = vmatmul.f32.vlgmr.msrb.gmra.mxu2 %v475_v11  ;;  %v476_v12 = vand.u32 4294901760, %v475_v11 }
 0x250   :  { %561 = vmatmul.f32.vlgmr.msrb.gmra.mxu3 %v476_v12  ;;  %v477_v13 = vsub.f32 %v475_v11, %v476_v12 }
 0x252   :  { %v478_v14 = vand.u32 4294901760, %v477_v13 }
 0x254   :  { %479 = vmatmul.f32.vlgmr.msrb.gmra.mxu0 %v478_v14  ;;  %611 = vmatmul.f32.vlgmr.msra.gmra.mxu1 %v474_v10 }
 0x25c   :  { %588 = vmatmul.f32.vlgmr.msra.gmra.mxu0 %v474_v10 }
 0x2a2   :  { %v630_v16 = vpop.xlane.xlu2 %629 }
 0x2a3   :  { %v631_v18 = vcvt.f32.s32 %v630_v16 }
 0x2a5   :  { %v634_v19 = vadd.s32 %v633_v17, %v631_v18 }
 0x2a7   :  { %636 = vst.msk [vmem:[%s862_s8] sm:$0xff] %vm635_vm12, %v634_v19 }
 0x2c9   :  { %v511_v20 = vpop.f32.mrf.mxu1 }
 0x2d1   :  { %v480_v21 = vpop.f32.mrf.mxu0  ;;  %v537_v23 = vpop.f32.mrf.mxu2 }
 0x2d2   :  { %v512_v22 = vadd.f32 %v511_v20, %v480_v21  ;;  %v612_v29 = vpop.f32.mrf.mxu1 }
 0x2d3   :  { %v562_v25 = vpop.f32.mrf.mxu3 }
 0x2d4   :  { %v538_v24 = vadd.f32 %v537_v23, %v512_v22 }
 0x2d6   :  { %v563_v26 = vadd.f32 %v562_v25, %v538_v24 }
 0x2d9   :  { %v589_v27 = vpop.f32.mrf.mxu0 }
 0x2da   :  { %v590_v28 = vadd.f32 %v589_v27, %v563_v26 }
 0x2dc   :  { %v613_v30 = vadd.f32 %v612_v29, %v590_v28 }
 0x2de   :  { %615 = vst.msk [vmem:[#allocation2] sm:$0xff] %vm40_vm0, %v613_v30 }
 0x2df   :  { %647 = dma.vmem_to_hbm [thread:$0]  %s643_s12, 128, %s645_s15, [#allocation3]  }
 0x2e0   :  { %735 = dma.done.wait [#allocation3], 128  }
 0x2e1   :  { %736 = vsyncadd [#allocation3], 4294967168 }
 0x2e2   :  { %737 = dma.done.wait [#allocation5], 128  }
 0x2e3   :  { %738 = vsyncadd [#allocation5], 4294967168 }
 0x2e4   :  { %671 = vsyncpa [#allocation3], 1 }
 0x2e5   :  { %672 = vsyncpa [#allocation5], 1 }

</bundles_post_ra>
